<compile_context>
chip_gen: v5e
topology: v5e:2x2
jax: 0.10.0
libtpu: 0.0.40
codegen_flags: <defaults>
</compile_context>

<pallas_src>
import functools

import jax
import jax.numpy as jnp
from jax.experimental import pallas as pl
from jax.experimental.pallas import tpu as pltpu


def _layernorm2d_kernel(x_ref, w_ref, b_ref, o_ref, *, eps, inv_c):
    # x_ref: (tile_n, C, tile_hw) -- channels on sublanes, spatial on lanes.
    # w_ref / b_ref: (1, C, 1) float32 -- broadcast across batch pages & lanes.
    x = x_ref[...].astype(jnp.float32)

    # Two-pass mean / biased variance over the channel (sublane) axis.
    mu = jnp.sum(x, axis=1, keepdims=True) * inv_c          # (tile_n, 1, tile_hw)
    xc = x - mu
    var = jnp.sum(xc * xc, axis=1, keepdims=True) * inv_c   # (tile_n, 1, tile_hw)
    inv_std = jax.lax.rsqrt(var + eps)                      # EUP

    w = w_ref[...]                                           # (1, C, 1) f32
    b = b_ref[...]
    o_ref[...] = (w * (xc * inv_std) + b).astype(o_ref.dtype)


def _pick_tile_hw(hw, c, itemsize, max_tile_bytes):
    """Largest lane-tile width (multiple of 128) under max_tile_bytes per tile."""
    budget = max(128, (max_tile_bytes // max(c * itemsize, 1)) // 128 * 128)
    if hw <= budget:
        return hw                       # full extent: always a legal block dim
    # Only accept an exact divisor if it is large enough to stay near the HBM
    # roofline; otherwise prefer a padded last block at full budget width.
    min_ok = max(512, (budget // 2) // 128 * 128)
    for cand in range(budget, min_ok - 1, -128):
        if hw % cand == 0:
            return cand
    return budget                       # cdiv grid, padded (masked) last block


def _choose_tiles(n, c, hw, itemsize, max_tile_bytes):
    """Returns (tile_n, tile_hw)."""
    row_bytes = c * hw * itemsize       # one full (C, HW) slab
    if row_bytes <= max_tile_bytes:
        # Full spatial extent per step; pack batch items to fill the budget.
        tile_n = max(1, min(n, max_tile_bytes // max(row_bytes, 1)))
        return tile_n, hw
    return 1, _pick_tile_hw(hw, c, itemsize, max_tile_bytes)


def layernorm2d(x_nchw, weight, bias, eps=1e-6, max_tile_bytes=2 << 20):
    N, C, H, W = x_nchw.shape
    HW = H * W

    # Free (contiguous) reshapes only: NCHW -> (N, C, H*W); params -> (1, C, 1) f32.
    x3d = x_nchw.reshape(N, C, HW)
    w3d = weight.astype(jnp.float32).reshape(1, C, 1)
    b3d = bias.astype(jnp.float32).reshape(1, C, 1)

    itemsize = jnp.dtype(x_nchw.dtype).itemsize
    tile_n, tile_hw = _choose_tiles(N, C, HW, itemsize, max_tile_bytes)
    grid = (pl.cdiv(N, tile_n), pl.cdiv(HW, tile_hw))

    # VMEM budget: 2x double-buffered input + 2x output tiles, plus the f32
    # temporaries the kernel materializes (x cast, x-mu, result), plus slack.
    tile_elems = tile_n * C * tile_hw
    footprint = 4 * tile_elems * itemsize + 4 * tile_elems * 4 + (2 << 20)
    vmem_limit = int(min(max(footprint, 4 << 20), 40 << 20))

    kernel = functools.partial(_layernorm2d_kernel, eps=float(eps), inv_c=1.0 / C)

    out3d = pl.pallas_call(
        kernel,
        out_shape=jax.ShapeDtypeStruct((N, C, HW), x_nchw.dtype),
        grid_spec=pltpu.PrefetchScalarGridSpec(
            num_scalar_prefetch=0,
            grid=grid,
            in_specs=[
                pl.BlockSpec((tile_n, C, tile_hw), lambda n, j: (n, 0, j)),
                pl.BlockSpec((1, C, 1), lambda n, j: (0, 0, 0)),
                pl.BlockSpec((1, C, 1), lambda n, j: (0, 0, 0)),
            ],
            out_specs=pl.BlockSpec((tile_n, C, tile_hw), lambda n, j: (n, 0, j)),
        ),
        compiler_params=pltpu.CompilerParams(
            dimension_semantics=("parallel", "parallel"),
            vmem_limit_bytes=vmem_limit,
        ),
    )(x3d, w3d, b3d)

    # Free reshape back to NCHW.
    return out3d.reshape(N, C, H, W)


def layernorm2d_ref(x, weight, bias, eps=1e-6):
    # Pure-JAX reference matching the PyTorch forward exactly (two-pass, biased var).
    mu = jnp.mean(x, axis=1, keepdims=True)
    var = jnp.mean((x - mu) ** 2, axis=1, keepdims=True)
    y = (x - mu) / jnp.sqrt(var + eps)
    return weight.reshape(1, -1, 1, 1) * y + bias.reshape(1, -1, 1, 1)


def _check(out, ref, atol=1e-4, rtol=1e-4):
    assert out.shape == ref.shape
    assert jnp.allclose(out, ref, atol=atol, rtol=rtol), (
        float(jnp.max(jnp.abs(out - ref))))


if __name__ == "__main__":
    key = jax.random.PRNGKey(0)
    k1, k2, k3, k4, k5, k6 = jax.random.split(key, 6)

    # Case 1: module-default params (ones / zeros), spec-sized input.
    N, C, H, W = 2, 4, 16, 16
    x = jax.random.normal(k1, (N, C, H, W), dtype=jnp.float32)
    weight = jnp.ones((C,), dtype=jnp.float32)
    bias = jnp.zeros((C,), dtype=jnp.float32)
    out = jax.block_until_ready(layernorm2d(x, weight, bias, eps=1e-6))
    _check(out, layernorm2d_ref(x, weight, bias, eps=1e-6))

    # Case 2: non-trivial affine params, batch-blocked full-extent path.
    N2, C2, H2, W2 = 2, 32, 8, 20
    x2 = jax.random.normal(k2, (N2, C2, H2, W2), dtype=jnp.float32)
    w2 = jax.random.normal(k3, (C2,), dtype=jnp.float32)
    b2 = jax.random.normal(k4, (C2,), dtype=jnp.float32)
    out2 = jax.block_until_ready(layernorm2d(x2, w2, b2, eps=1e-6))
    _check(out2, layernorm2d_ref(x2, w2, b2, eps=1e-6))

    # Case 3: padded last spatial block (HW=336 with 256-wide lane tiles) and a
    # non-zero-mean input to exercise the two-pass variance numerics.
    N3, C3, H3, W3 = 2, 8, 16, 21
    x3 = 10.0 + 0.5 * jax.random.normal(k5, (N3, C3, H3, W3), dtype=jnp.float32)
    w3 = jax.random.normal(k6, (C3,), dtype=jnp.float32)
    b3 = jnp.zeros((C3,), dtype=jnp.float32)
    out3 = jax.block_until_ready(
        layernorm2d(x3, w3, b3, eps=1e-6, max_tile_bytes=8192))
    _check(out3, layernorm2d_ref(x3, w3, b3, eps=1e-6))

    # Case 4: padded last batch block (N=5, tile_n=2 -> cdiv grid on batch).
    N4, C4, H4, W4 = 5, 8, 8, 16
    x4 = jax.random.normal(k1, (N4, C4, H4, W4), dtype=jnp.float32)
    w4 = jax.random.normal(k2, (C4,), dtype=jnp.float32)
    b4 = jax.random.normal(k3, (C4,), dtype=jnp.float32)
    out4 = jax.block_until_ready(
        layernorm2d(x4, w4, b4, eps=1e-6, max_tile_bytes=8192))
    _check(out4, layernorm2d_ref(x4, w4, b4, eps=1e-6))

    print("KERNEL_OK")
</pallas_src>

<mosaic_0001>
module attributes {stable_mosaic.version = 11 : i64} {
  func.func @_layernorm2d_kernel(%arg0: i32, %arg1: i32, %arg2: memref<2x4x256xf32, #tpu.memory_space<vmem>>, %arg3: memref<1x4x1xf32, #tpu.memory_space<vmem>>, %arg4: memref<1x4x1xf32, #tpu.memory_space<vmem>>, %arg5: memref<2x4x256xf32, #tpu.memory_space<vmem>>) attributes {dimension_semantics = [#tpu.dimension_semantics<parallel>, #tpu.dimension_semantics<parallel>], iteration_bounds = array<i64: 1, 1>, scalar_prefetch = 0 : i64, scratch_operands = 0 : i64, tpu.core_type = #tpu.core_type<tc>, window_params = [{transform_indices = @transform_0, window_bounds = array<i64: 2, 4, 256>}, {pipeline_mode = #tpu.pipeline_mode<synchronous>, transform_indices = @transform_1, window_bounds = array<i64: 1, 4, 1>}, {pipeline_mode = #tpu.pipeline_mode<synchronous>, transform_indices = @transform_2, window_bounds = array<i64: 1, 4, 1>}, {transform_indices = @transform_3, window_bounds = array<i64: 2, 4, 256>}]} {
    %c0 = arith.constant 0 : index
    %c0_0 = arith.constant 0 : index
    %c0_1 = arith.constant 0 : index
    %0 = vector.load %arg2[%c0, %c0_0, %c0_1] : memref<2x4x256xf32, #tpu.memory_space<vmem>>, vector<2x4x256xf32>
    %cst = arith.constant dense<0.000000e+00> : vector<2x256xf32>
    %1 = vector.multi_reduction <add>, %0, %cst [1] : vector<2x4x256xf32> to vector<2x256xf32>
    %2 = vector.shape_cast %1 : vector<2x256xf32> to vector<2x1x256xf32>
    %cst_2 = arith.constant 2.500000e-01 : f32
    %3 = vector.broadcast %cst_2 : f32 to vector<2x1x256xf32>
    %4 = arith.mulf %2, %3 : vector<2x1x256xf32>
    %5 = vector.broadcast %4 : vector<2x1x256xf32> to vector<2x4x256xf32>
    %6 = arith.subf %0, %5 : vector<2x4x256xf32>
    %7 = arith.mulf %6, %6 : vector<2x4x256xf32>
    %cst_3 = arith.constant dense<0.000000e+00> : vector<2x256xf32>
    %8 = vector.multi_reduction <add>, %7, %cst_3 [1] : vector<2x4x256xf32> to vector<2x256xf32>
    %9 = vector.shape_cast %8 : vector<2x256xf32> to vector<2x1x256xf32>
    %cst_4 = arith.constant 2.500000e-01 : f32
    %10 = vector.broadcast %cst_4 : f32 to vector<2x1x256xf32>
    %11 = arith.mulf %9, %10 : vector<2x1x256xf32>
    %cst_5 = arith.constant 9.99999997E-7 : f32
    %12 = vector.broadcast %cst_5 : f32 to vector<2x1x256xf32>
    %13 = arith.addf %11, %12 : vector<2x1x256xf32>
    %14 = math.rsqrt %13 : vector<2x1x256xf32>
    %c0_6 = arith.constant 0 : index
    %c0_7 = arith.constant 0 : index
    %c0_8 = arith.constant 0 : index
    %15 = vector.load %arg3[%c0_6, %c0_7, %c0_8] : memref<1x4x1xf32, #tpu.memory_space<vmem>>, vector<1x4x1xf32>
    %c0_9 = arith.constant 0 : index
    %c0_10 = arith.constant 0 : index
    %c0_11 = arith.constant 0 : index
    %16 = vector.load %arg4[%c0_9, %c0_10, %c0_11] : memref<1x4x1xf32, #tpu.memory_space<vmem>>, vector<1x4x1xf32>
    %17 = vector.broadcast %14 : vector<2x1x256xf32> to vector<2x4x256xf32>
    %18 = arith.mulf %6, %17 : vector<2x4x256xf32>
    %19 = vector.broadcast %15 : vector<1x4x1xf32> to vector<2x4x256xf32>
    %20 = arith.mulf %19, %18 : vector<2x4x256xf32>
    %21 = vector.broadcast %16 : vector<1x4x1xf32> to vector<2x4x256xf32>
    %22 = arith.addf %20, %21 : vector<2x4x256xf32>
    %c0_12 = arith.constant 0 : index
    %c0_13 = arith.constant 0 : index
    %c0_14 = arith.constant 0 : index
    %23 = vector.load %arg5[%c0_12, %c0_13, %c0_14] : memref<2x4x256xf32, #tpu.memory_space<vmem>>, vector<2x4x256xf32>
    tpu.vector_store %arg5[%c0_12, %c0_13, %c0_14], %22 {strides = array<i32>} : memref<2x4x256xf32, #tpu.memory_space<vmem>>, vector<2x4x256xf32>,
    return
  }
  func.func @transform_0(%arg0: i32, %arg1: i32) -> (i32, i32, i32) {
    %c0_i32 = arith.constant 0 : i32
    %c0_i32_0 = arith.constant 0 : i32
    return %arg0, %c0_i32, %arg1 : i32, i32, i32
  }
  func.func @transform_1(%arg0: i32, %arg1: i32) -> (i32, i32, i32) {
    %c0_i32 = arith.constant 0 : i32
    %c0_i32_0 = arith.constant 0 : i32
    %c0_i32_1 = arith.constant 0 : i32
    %c0_i32_2 = arith.constant 0 : i32
    return %c0_i32, %c0_i32_0, %c0_i32_1 : i32, i32, i32
  }
  func.func @transform_2(%arg0: i32, %arg1: i32) -> (i32, i32, i32) {
    %c0_i32 = arith.constant 0 : i32
    %c0_i32_0 = arith.constant 0 : i32
    %c0_i32_1 = arith.constant 0 : i32
    %c0_i32_2 = arith.constant 0 : i32
    return %c0_i32, %c0_i32_0, %c0_i32_1 : i32, i32, i32
  }
  func.func @transform_3(%arg0: i32, %arg1: i32) -> (i32, i32, i32) {
    %c0_i32 = arith.constant 0 : i32
    %c0_i32_0 = arith.constant 0 : i32
    return %arg0, %c0_i32, %arg1 : i32, i32, i32
  }
}

</mosaic_0001>

<bundles_post_ra>
// kernel: tpu_custom_call.1
= control target key start
LH: loop header
LB: loop body
LE: loop exit
PB: predicated region body
PF: predicated region fallthrough
CT: control target
= control target key end

     0   :  { %8 = vsyncpa [#allocation3], 0  ;;  %s403_s0 = inlined_call_operand.hbm [shape: f32[2,4,256], index: 0, kind: input, shape index: {}]   ;;  %s404_s1 = inlined_call_operand.vmem [shape: f32[1,4,1], index: 1, kind: input, shape index: {}]   ;;  %s405_s2 = inlined_call_operand.vmem [shape: f32[1,4,1], index: 2, kind: input, shape index: {}]   ;;  %s406_s3 = inlined_call_operand.hbm [shape: f32[2,4,256], index: 3, kind: output, shape index: {}]  }
   0x1   :  { %9 = vsyncpa [#allocation4], 0  ;;  %s14_s14 = sshll.u32 %s403_s0, 4  ;;  %s324_s15 = smov [#allocation2]   ;;  %s15_s14 = int_to_ptr.hbm [resolvable:$true] %s14_s14 }
   0x2   :  { %s16_s16 = sshll.u32 %s324_s15, 4  ;;  %s325_s17 = smov 128   ;;  %s17_s16 = int_to_ptr.vmem [resolvable:$true] %s16_s16 }
   0x3   :  { %s326_s18 = smov 8  }
   0x4   :  { %22 = dma.hbm_to_vmem [thread:$0]  %s15_s14, 256, %s17_s16, [#allocation3], %s325_s17, %s325_s17, %s326_s18  }
   0x5   :  { %320 = dma.done.wait [#allocation3], 256  }
   0x6   :  { %321 = vsyncadd [#allocation3], 4294967040  ;;  %v327_v0 = vmov 0   ;;  %v182_v1 = vld [vmem:[%s404_s1] sm:$0xf]  ;;  %v31_v2 = vld [vmem:[#allocation2] sm:$0xff] }
   0x7   :  { %263 = vset.pattern.permute.xlu0 %v327_v0  ;;  %v32_v3 = vld [vmem:[#allocation2 + $0x8] sm:$0xff]  ;;  %35 = vst [vmem:[#allocation1] ss:$2 sm:$0xff] %v31_v2  ;;  %v183_v4 = vld [vmem:[%s405_s2] sm:$0xf]  ;;  %vm46_vm0 = vcmask 1043456  }
   0x8   :  { %198 = vperm.xlu0 %263, %v182_v1   ;;  %39 = vst [vmem:[#allocation1 + $0x10] ss:$2 sm:$0xff] %v32_v3  ;;  %s328_s1 = smov [#allocation5]   ;;  %s245_s24 = sshll.u32 %s406_s3, 4  ;;  %s246_s24 = int_to_ptr.hbm [resolvable:$true] %s245_s24 }
   0x9   :  { %s243_s2 = sshll.u32 %s328_s1, 4  ;;  %s244_s2 = int_to_ptr.vmem [resolvable:$true] %s243_s2 }
   0xe   :  { %v36_v5 = vld.sshfl [vmem:[#allocation1] sm:$0xff pattern:$0x75316420]  ;;  %v37_v6 = vld.sshfl [vmem:[#allocation1 + $0x8] sm:$0xff pattern:$0x75316420] }
   0xf   :  { %v40_v7 = vld.sshfl [vmem:[#allocation1 + $0x10] sm:$0xff pattern:$0x75316420]  ;;  %v41_v8 = vld.sshfl [vmem:[#allocation1 + $0x18] sm:$0xff pattern:$0x75316420] }
  0x10   :  { %220 = vperm.xlu0 %263, %v183_v4   ;;  %v47_v9 = vsel %vm46_vm0, %v36_v5, 0.0  ;;  %v54_v10 = vsel %vm46_vm0, %v37_v6, 0.0  ;;  %v61_v11 = vsel %vm46_vm0, %v40_v7, 0.0  ;;  %v68_v12 = vsel %vm46_vm0, %v41_v8, 0.0 }
  0x11   :  { %v48_v13 = vrot.slane %v47_v9, 4  ;;  %v55_v14 = vrot.slane %v54_v10, 4  ;;  %v62_v15 = vrot.slane %v61_v11, 4  ;;  %v69_v16 = vrot.slane %v68_v12, 4 }
  0x13   :  { %v49_v17 = vadd.f32 %v48_v13, %v47_v9  ;;  %v56_v18 = vadd.f32 %v55_v14, %v54_v10  ;;  %v63_v19 = vadd.f32 %v62_v15, %v61_v11  ;;  %v70_v20 = vadd.f32 %v69_v16, %v68_v12 }
  0x15   :  { %v50_v21 = vrot.slane %v49_v17, 2  ;;  %v57_v22 = vrot.slane %v56_v18, 2  ;;  %v64_v23 = vrot.slane %v63_v19, 2  ;;  %v71_v24 = vrot.slane %v70_v20, 2 }
  0x17   :  { %v51_v25 = vadd.f32 %v50_v21, %v49_v17  ;;  %v58_v26 = vadd.f32 %v57_v22, %v56_v18  ;;  %v65_v27 = vadd.f32 %v64_v23, %v63_v19  ;;  %v72_v28 = vadd.f32 %v71_v24, %v70_v20 }
  0x19   :  { %v52_v29 = vrot.slane %v51_v25, 1  ;;  %v59_v30 = vrot.slane %v58_v26, 1  ;;  %v66_v31 = vrot.slane %v65_v27, 1  ;;  %v73_v32 = vrot.slane %v72_v28, 1 }
  0x1b   :  { %v53_v33 = vadd.f32 %v52_v29, %v51_v25  ;;  %v60_v34 = vadd.f32 %v59_v30, %v58_v26  ;;  %v67_v35 = vadd.f32 %v66_v31, %v65_v27  ;;  %v74_v36 = vadd.f32 %v73_v32, %v72_v28 }
  0x1d   :  { %v75_v37 = vmul.f32 0.25, %v53_v33  ;;  %v76_v38 = vmul.f32 0.25, %v60_v34  ;;  %v77_v39 = vmul.f32 0.25, %v67_v35  ;;  %v78_v40 = vmul.f32 0.25, %v74_v36 }
  0x1f   :  { %v83_v41 = vrot.slane %v76_v38, 4  ;;  %v84_v42 = vrot.slane %v78_v40, 4 }
  0x21   :  { %v85_v43 = vsel %vm46_vm0, %v75_v37, %v83_v41  ;;  %v86_v44 = vsel %vm46_vm0, %v77_v39, %v84_v42 }
  0x22   :  { %v367_v45 = vsub.f32 %v31_v2, %v85_v43  ;;  %v369_v46 = vsub.f32 %v32_v3, %v86_v44 }
  0x24   :  { %v91_v47 = vmul.f32 %v367_v45, %v367_v45  ;;  %v92_v48 = vmul.f32 %v369_v46, %v369_v46 }
  0x26   :  { %95 = vst [vmem:[#allocation1] ss:$2 sm:$0xff] %v91_v47 }
  0x27   :  { %99 = vst [vmem:[#allocation1 + $0x10] ss:$2 sm:$0xff] %v92_v48 }
  0x2d   :  { %v96_v49 = vld.sshfl [vmem:[#allocation1] sm:$0xff pattern:$0x75316420]  ;;  %v97_v50 = vld.sshfl [vmem:[#allocation1 + $0x8] sm:$0xff pattern:$0x75316420] }
  0x2e   :  { %v100_v51 = vld.sshfl [vmem:[#allocation1 + $0x10] sm:$0xff pattern:$0x75316420]  ;;  %v101_v52 = vld.sshfl [vmem:[#allocation1 + $0x18] sm:$0xff pattern:$0x75316420] }
  0x2f   :  { %v106_v53 = vsel %vm46_vm0, %v96_v49, 0.0  ;;  %v113_v54 = vsel %vm46_vm0, %v97_v50, 0.0  ;;  %v120_v55 = vsel %vm46_vm0, %v100_v51, 0.0  ;;  %v127_v56 = vsel %vm46_vm0, %v101_v52, 0.0 }
  0x30   :  { %v107_v57 = vrot.slane %v106_v53, 4  ;;  %v114_v58 = vrot.slane %v113_v54, 4  ;;  %v121_v59 = vrot.slane %v120_v55, 4  ;;  %v128_v60 = vrot.slane %v127_v56, 4 }
  0x32   :  { %v108_v61 = vadd.f32 %v107_v57, %v106_v53  ;;  %v115_v62 = vadd.f32 %v114_v58, %v113_v54  ;;  %v122_v63 = vadd.f32 %v121_v59, %v120_v55  ;;  %v129_v0 = vadd.f32 %v128_v60, %v127_v56 }
  0x34   :  { %v109_v1 = vrot.slane %v108_v61, 2  ;;  %v116_v2 = vrot.slane %v115_v62, 2  ;;  %v123_v3 = vrot.slane %v122_v63, 2  ;;  %v130_v4 = vrot.slane %v129_v0, 2 }
  0x36   :  { %v110_v5 = vadd.f32 %v109_v1, %v108_v61  ;;  %v117_v6 = vadd.f32 %v116_v2, %v115_v62  ;;  %v124_v7 = vadd.f32 %v123_v3, %v122_v63  ;;  %v131_v8 = vadd.f32 %v130_v4, %v129_v0 }
  0x38   :  { %v111_v9 = vrot.slane %v110_v5, 1  ;;  %v118_v10 = vrot.slane %v117_v6, 1  ;;  %v125_v11 = vrot.slane %v124_v7, 1  ;;  %v132_v12 = vrot.slane %v131_v8, 1 }
  0x3a   :  { %v112_v13 = vadd.f32 %v111_v9, %v110_v5  ;;  %v119_v14 = vadd.f32 %v118_v10, %v117_v6  ;;  %v126_v15 = vadd.f32 %v125_v11, %v124_v7  ;;  %v133_v16 = vadd.f32 %v132_v12, %v131_v8 }
  0x3c   :  { %v134_v17 = vmul.f32 0.25, %v112_v13  ;;  %v135_v18 = vmul.f32 0.25, %v119_v14  ;;  %v136_v19 = vmul.f32 0.25, %v126_v15  ;;  %v137_v20 = vmul.f32 0.25, %v133_v16 }
  0x3e   :  { %v138_v21 = vadd.f32 1e-06, %v134_v17  ;;  %v139_v22 = vadd.f32 1e-06, %v135_v18  ;;  %v140_v23 = vadd.f32 1e-06, %v136_v19 }
  0x3f   :  { %v141_v24 = vadd.f32 1e-06, %v137_v20 }
  0x40   :  { %264 = vrsqrt.f32 %v138_v21  ;;  %vm158_vm1 = vweird.f32 %v139_v22  ;;  %vm148_vm3 = vweird.f32 %v138_v21  ;;  %vm168_vm6 = vweird.f32 %v140_v23 }
  0x41   :  { %266 = vrsqrt.f32 %v139_v22  ;;  %vm178_vm7 = vweird.f32 %v141_v24 }
  0x42   :  { %268 = vrsqrt.f32 %v140_v23 }
  0x43   :  { %270 = vrsqrt.f32 %v141_v24 }
  0x46   :  { %v265_v25 = vpop.eup %264 }
  0x47   :  { %v267_v26 = vpop.eup %266  ;;  %v143_v27 = vmul.f32 %v265_v25, %v138_v21  ;;  %vm149_vm4 = vweird.f32 %v265_v25 }
  0x48   :  { %v269_v28 = vpop.eup %268  ;;  %v153_v29 = vmul.f32 %v267_v26, %v139_v22  ;;  %vm159_vm2 = vweird.f32 %v267_v26  ;;  %vm383_vm9 = vmor %vm148_vm3, %vm149_vm4 }
  0x49   :  { %v271_v30 = vpop.eup %270  ;;  %v144_v31 = vmul.f32 %v265_v25, %v143_v27  ;;  %v163_v32 = vmul.f32 %v269_v28, %v140_v23  ;;  %vm379_vm5 = vmor %vm158_vm1, %vm159_vm2  ;;  %vm169_vm10 = vweird.f32 %v269_v28 }
  0x4a   :  { %v154_v33 = vmul.f32 %v267_v26, %v153_v29  ;;  %v173_v34 = vmul.f32 %v271_v30, %v141_v24  ;;  %vm179_vm8 = vweird.f32 %v271_v30  ;;  %vm170_vm12 = vmor %vm168_vm6, %vm169_vm10 }
  0x4b   :  { %v145_v35 = vmul.f32 0.5, %v144_v31  ;;  %v164_v36 = vmul.f32 %v269_v28, %v163_v32  ;;  %vm180_vm11 = vmor %vm178_vm7, %vm179_vm8 }
  0x4c   :  { %v155_v37 = vmul.f32 0.5, %v154_v33  ;;  %v174_v40 = vmul.f32 %v271_v30, %v173_v34 }
  0x4d   :  { %v146_v38 = vsub.f32 1.5, %v145_v35  ;;  %v165_v39 = vmul.f32 0.5, %v164_v36 }
  0x4e   :  { %v156_v41 = vsub.f32 1.5, %v155_v37  ;;  %v175_v48 = vmul.f32 0.5, %v174_v40 }
  0x4f   :  { %v147_v43 = vmul.f32 %v265_v25, %v146_v38  ;;  %v166_v47 = vsub.f32 1.5, %v165_v39 }
  0x50   :  { %v157_v49 = vmul.f32 %v267_v26, %v156_v41  ;;  %v176_v51 = vsub.f32 1.5, %v175_v48 }
  0x51   :  { %v167_v50 = vmul.f32 %v269_v28, %v166_v47  ;;  %v151_v52 = vsel %vm383_vm9, %v265_v25, %v147_v43 }
  0x52   :  { %v161_v53 = vsel %vm379_vm5, %v267_v26, %v157_v49  ;;  %v177_v54 = vmul.f32 %v271_v30, %v176_v51 }
  0x53   :  { %v188_v55 = vrot.slane %v161_v53, 4  ;;  %v171_v56 = vsel %vm170_vm12, %v269_v28, %v167_v50 }
  0x54   :  { %v181_v57 = vsel %vm180_vm11, %v271_v30, %v177_v54 }
  0x55   :  { %v190_v58 = vsel %vm46_vm0, %v151_v52, %v188_v55  ;;  %v189_v59 = vrot.slane %v181_v57, 4 }
  0x56   :  { %v194_v60 = vmul.f32 %v190_v58, %v367_v45 }
  0x57   :  { %v191_v61 = vsel %vm46_vm0, %v171_v56, %v189_v59 }
  0x58   :  { %203 = vst [vmem:[#allocation1] ss:$2 sm:$0xff] %v194_v60  ;;  %v195_v62 = vmul.f32 %v191_v61, %v369_v46 }
  0x5a   :  { %207 = vst [vmem:[#allocation1 + $0x10] ss:$2 sm:$0xff] %v195_v62 }
  0x5f   :  { %v205_v0 = vld.sshfl [vmem:[#allocation1 + $0x8] sm:$0xff pattern:$0x75316420]  ;;  %v204_v2 = vld.sshfl [vmem:[#allocation1] sm:$0xff pattern:$0x75316420] }
  0x61   :  { %v209_v1 = vld.sshfl [vmem:[#allocation1 + $0x18] sm:$0xff pattern:$0x75316420]  ;;  %v208_v3 = vld.sshfl [vmem:[#allocation1 + $0x10] sm:$0xff pattern:$0x75316420] }
  0x7a   :  { %v199_v63 = vpop.permute.xlu0 %198 }
  0x7b   :  { %v215_v4 = vmul.f32 %v205_v0, %v199_v63  ;;  %v217_v5 = vmul.f32 %v209_v1, %v199_v63  ;;  %v214_v7 = vmul.f32 %v204_v2, %v199_v63  ;;  %v216_v8 = vmul.f32 %v208_v3, %v199_v63 }
  0x82   :  { %v221_v6 = vpop.permute.xlu0 %220 }
  0x83   :  { %v224_v9 = vadd.f32 %v221_v6, %v215_v4  ;;  %v226_v10 = vadd.f32 %v221_v6, %v217_v5  ;;  %v223_v45 = vadd.f32 %v221_v6, %v214_v7  ;;  %v225_v46 = vadd.f32 %v221_v6, %v216_v8 }
  0x85   :  { %v231_v11 = vrot.slane %v224_v9, 4  ;;  %v232_v12 = vrot.slane %v226_v10, 4 }
  0x87   :  { %v233_v13 = vsel %vm46_vm0, %v223_v45, %v231_v11  ;;  %v234_v14 = vsel %vm46_vm0, %v225_v46, %v232_v12 }
  0x88   :  { %237 = vst [vmem:[#allocation5] sm:$0xff] %v233_v13 }
  0x89   :  { %238 = vst [vmem:[#allocation5 + $0x8] sm:$0xff] %v234_v14 }
  0x8a   :  { %251 = dma.vmem_to_hbm [thread:$0]  %s244_s2, 256, %s246_s24, [#allocation4], %s325_s17, %s325_s17, %s326_s18  }
  0x8b   :  { %322 = dma.done.wait [#allocation4], 256  }
  0x8c   :  { %323 = vsyncadd [#allocation4], 4294967040 }
  0x8d   :  { %256 = vsyncpa [#allocation3], 1 }
  0x8e   :  { %257 = vsyncpa [#allocation4], 1 }

</bundles_post_ra>
